<compile_context>
chip_gen: v7x
topology: tpu7x:2x2x1
jax: 0.10.0
libtpu: 0.0.40
codegen_flags: <defaults>
</compile_context>

<pallas_src>
import jax
import jax.numpy as jnp
from jax.experimental import pallas as pl
from jax.experimental.pallas import tpu as pltpu

ALPHA = 3.0
INPUT_DIM = 784
OUTPUT_SIZES = [300, 100, 10]

LANE = 128
SUBLANE = 8


def _round_up(n, m):
    return ((n + m - 1) // m) * m


def _powerprop_reparam(w, alpha):
    """params = w * |w|^(alpha-1), computed in f32.  Runs ONCE at prepare time
    (hoisted out of the kernel); unrolled to multiplies for small integer alpha."""
    a = float(alpha)
    if a == round(a) and 1.0 <= a <= 8.0:
        p = w
        aw = jnp.abs(w)
        for _ in range(int(a) - 1):
            p = p * aw          # alpha=3 -> w * |w| * |w|
        return p
    return w * jnp.power(jnp.abs(w), a - 1.0)


def _fused_mlp_kernel(x_ref, w1_ref, b1_ref, w2_ref, b2_ref, w3_ref, b3_ref, o_ref):
    """Fused 3-layer MLP forward on one batch tile (everything stays in VMEM).
    Weights arrive already reparameterized, transposed to (in, out), padded, cast."""
    # TODO(synk): the optional per-layer `masks` argument of the torch module is
    # not implemented (masks=None path only).

    def layer(a, w_ref, b_ref, relu):
        w = w_ref[...]
        h = jnp.dot(a.astype(w.dtype), w, preferred_element_type=jnp.float32)
        h = h + b_ref[...]                       # (1, out_pad) f32 broadcast
        if relu:
            h = jnp.maximum(h, 0.0)
        return h

    h = x_ref[...]
    h = layer(h, w1_ref, b1_ref, relu=True)
    h = layer(h, w2_ref, b2_ref, relu=True)
    h = layer(h, w3_ref, b3_ref, relu=False)
    o_ref[...] = h.astype(o_ref.dtype)


def init_params(key, alpha, input_dim=INPUT_DIM, output_sizes=OUTPUT_SIZES):
    """Torch-layout params mimicking PowerPropLinear.reset_parameters:
    uniform(-1/sqrt(fan_in), 1/sqrt(fan_in)), then sign(w)*|w|^(1/alpha)."""
    dims = [input_dim] + list(output_sizes)
    params = []
    for i in range(1, len(dims)):
        fan_in, fan_out = dims[i - 1], dims[i]
        key, kw, kb = jax.random.split(key, 3)
        bound = 1.0 / jnp.sqrt(float(fan_in))
        w = jax.random.uniform(kw, (fan_out, fan_in), jnp.float32,
                               minval=-bound, maxval=bound)
        w = jnp.sign(w) * jnp.power(jnp.abs(w), 1.0 / alpha)
        b = jax.random.uniform(kb, (fan_out,), jnp.float32,
                               minval=-bound, maxval=bound)
        params.append((w, b))
    return params


def prepare_params(params, alpha, weights_dtype=jnp.bfloat16):
    """One-time prep (re-run whenever the stored weights change):
      * powerprop reparam w*|w|^(alpha-1) in f32 (hoisted out of the kernel),
      * transpose to (in, out) so the MXU contracts x's feature dim directly,
      * zero-pad the OUTPUT feature dim to a multiple of 128 (lane-dense stores);
        layer 1 keeps its true 784 input dim so x needs no feature padding,
      * cast the reparameterized f32 weights to bf16 (default) for the bf16 MXU.
    Zero padding guarantees padded lanes contribute exactly 0 through bias+ReLU."""
    prepared = []
    for li, (w, b) in enumerate(params):
        out_dim, in_dim = w.shape
        p = _powerprop_reparam(w.astype(jnp.float32), alpha)
        in_p = in_dim if li == 0 else _round_up(in_dim, LANE)
        out_p = _round_up(out_dim, LANE)
        wt = jnp.zeros((in_p, out_p), jnp.float32).at[:in_dim, :out_dim].set(p.T)
        wt = wt.astype(weights_dtype)
        bp = jnp.zeros((1, out_p), jnp.float32).at[0, :out_dim].set(
            b.reshape(-1).astype(jnp.float32))
        prepared.append((wt, bp))
    return prepared


def _choose_tiling(batch, batch_tile_max):
    """Pick (tile_b, n_tiles). Tiny batches: one full-array tile (no row padding).
    Otherwise: >=2 tiles (so both v7x TensorCores get work) split as evenly as
    possible in multiples of 8, which minimizes row-padding waste for odd batches."""
    if batch < 2 * SUBLANE:
        return batch, 1
    n_tiles = max(2, -(-batch // batch_tile_max))
    tile_b = _round_up(-(-batch // n_tiles), SUBLANE)
    return tile_b, n_tiles


def mlp_forward(x, prepared, *, out_dim=OUTPUT_SIZES[-1], batch_tile_max=512):
    """Fused forward pass. `prepared` is the output of prepare_params."""
    batch, in_dim = x.shape
    (w1, b1), (w2, b2), (w3, b3) = prepared
    assert w1.shape[0] == in_dim, "layer-1 weights must keep the true input dim"
    h1_pad, h2_pad, out_pad = w1.shape[1], w2.shape[1], w3.shape[1]

    tile_b, n_tiles = _choose_tiling(batch, batch_tile_max)
    b_pad = tile_b * n_tiles
    # Row-only padding (feature dim stays 784); no-op when the batch divides evenly.
    x_p = x if b_pad == batch else jnp.pad(x, ((0, b_pad - batch), (0, 0)))

    w_bytes = sum(int(a.size) * a.dtype.itemsize for a in (w1, b1, w2, b2, w3, b3))
    flops = 2 * b_pad * (in_dim * h1_pad + h1_pad * h2_pad + h2_pad * out_pad)
    bytes_accessed = int(x_p.size) * x_p.dtype.itemsize + w_bytes + b_pad * out_pad * 4

    # Working-set estimate -> explicit scoped-VMEM limit (headroom, clamped so it
    # stays valid on v5e's 16 MiB default scope and v7x's 64 MiB physical VMEM).
    vmem_est = (2 * tile_b * in_dim * 4            # double-buffered x tiles
                + 2 * tile_b * out_pad * 4         # double-buffered out tiles
                + 2 * w_bytes                      # weight/bias buffers
                + tile_b * (h1_pad + h2_pad) * 4   # live f32 intermediates
                + (1 << 20))                       # slack
    vmem_limit = int(min(64 << 20, max(32 << 20, 2 * vmem_est)))

    def full_spec(arr):
        return pl.BlockSpec(arr.shape, lambda i: (0, 0))

    out_p = pl.pallas_call(
        _fused_mlp_kernel,
        out_shape=jax.ShapeDtypeStruct((b_pad, out_pad), jnp.float32),
        grid=(n_tiles,),
        in_specs=[
            pl.BlockSpec((tile_b, in_dim), lambda i: (i, 0)),   # x: tiled over batch
            full_spec(w1), full_spec(b1),
            full_spec(w2), full_spec(b2),
            full_spec(w3), full_spec(b3),
        ],
        out_specs=pl.BlockSpec((tile_b, out_pad), lambda i: (i, 0)),
        compiler_params=pltpu.CompilerParams(
            dimension_semantics=("parallel",),
            vmem_limit_bytes=vmem_limit),
        cost_estimate=pl.CostEstimate(flops=int(flops), transcendentals=0,
                                      bytes_accessed=int(bytes_accessed)),
    )(x_p, w1, b1, w2, b2, w3, b3)

    return out_p[:batch, :out_dim]


def mlp_forward_ref(x, params, *, alpha):
    """Pure-JAX f32 reference with exact torch-module semantics."""
    num_layers = len(params)
    h = x
    for i, (w, b) in enumerate(params):
        p = w * jnp.power(jnp.abs(w), alpha - 1.0)
        h = h @ p.T + b.reshape(1, -1)
        if i < num_layers - 1:
            h = jnp.maximum(h, 0.0)
    return h


def mlp_forward_ref_prepared(x, prepared):
    """Reference using the SAME prepared (reparam'd / padded / bf16) weights as the
    kernel — tight check of the kernel logic independent of bf16 quantization."""
    num_layers = len(prepared)
    h = x.astype(jnp.float32)
    for i, (w, b) in enumerate(prepared):
        h = jnp.dot(h.astype(w.dtype), w, preferred_element_type=jnp.float32) + b
        if i < num_layers - 1:
            h = jnp.maximum(h, 0.0)
    return h


if __name__ == "__main__":
    key = jax.random.PRNGKey(0)
    key, kx = jax.random.split(key)

    batch = 2
    x = jax.random.normal(kx, (batch, INPUT_DIM), jnp.float32)
    params = init_params(key, ALPHA)
    prepared = prepare_params(params, ALPHA, weights_dtype=jnp.bfloat16)

    out = mlp_forward(x, prepared)
    out = jax.block_until_ready(out)
    assert out.shape == (batch, OUTPUT_SIZES[-1])

    # Tight check vs a reference using the identical prepared bf16 weights.
    ref_matched = mlp_forward_ref_prepared(x, prepared)[:, :OUTPUT_SIZES[-1]]
    assert jnp.allclose(out, ref_matched, atol=1e-2, rtol=1e-2), "kernel != matched ref"

    # Loose check vs the exact f32 torch semantics (bf16 MXU quantization error).
    ref_f32 = mlp_forward_ref(x, params, alpha=ALPHA)
    assert jnp.allclose(out, ref_f32, atol=5e-2, rtol=5e-2), "kernel != f32 ref"

    print("KERNEL_OK")
</pallas_src>

<mosaic_0001>
module attributes {stable_mosaic.version = 11 : i64} {
  func.func @_fused_mlp_kernel(%arg0: i32, %arg1: memref<2x784xf32, #tpu.memory_space<vmem>>, %arg2: memref<784x384xbf16, #tpu.memory_space<vmem>>, %arg3: memref<1x384xf32, #tpu.memory_space<vmem>>, %arg4: memref<384x128xbf16, #tpu.memory_space<vmem>>, %arg5: memref<1x128xf32, #tpu.memory_space<vmem>>, %arg6: memref<128x128xbf16, #tpu.memory_space<vmem>>, %arg7: memref<1x128xf32, #tpu.memory_space<vmem>>, %arg8: memref<2x128xf32, #tpu.memory_space<vmem>>) attributes {dimension_semantics = [#tpu.dimension_semantics<parallel>], iteration_bounds = array<i64: 1>, scalar_prefetch = 0 : i64, scratch_operands = 0 : i64, tpu.core_type = #tpu.core_type<tc>, window_params = [{transform_indices = @transform_0, window_bounds = array<i64: 2, 784>}, {pipeline_mode = #tpu.pipeline_mode<synchronous>, transform_indices = @transform_1, window_bounds = array<i64: 784, 384>}, {pipeline_mode = #tpu.pipeline_mode<synchronous>, transform_indices = @transform_2, window_bounds = array<i64: 1, 384>}, {pipeline_mode = #tpu.pipeline_mode<synchronous>, transform_indices = @transform_3, window_bounds = array<i64: 384, 128>}, {pipeline_mode = #tpu.pipeline_mode<synchronous>, transform_indices = @transform_4, window_bounds = array<i64: 1, 128>}, {pipeline_mode = #tpu.pipeline_mode<synchronous>, transform_indices = @transform_5, window_bounds = array<i64: 128, 128>}, {pipeline_mode = #tpu.pipeline_mode<synchronous>, transform_indices = @transform_6, window_bounds = array<i64: 1, 128>}, {transform_indices = @transform_7, window_bounds = array<i64: 2, 128>}]} {
    %c0 = arith.constant 0 : index
    %c0_0 = arith.constant 0 : index
    %0 = vector.load %arg1[%c0, %c0_0] : memref<2x784xf32, #tpu.memory_space<vmem>>, vector<2x784xf32>
    %c0_1 = arith.constant 0 : index
    %c0_2 = arith.constant 0 : index
    %1 = vector.load %arg2[%c0_1, %c0_2] : memref<784x384xbf16, #tpu.memory_space<vmem>>, vector<784x384xbf16>
    %2 = arith.truncf %0 : vector<2x784xf32> to vector<2x784xbf16>
    %cst = arith.constant dense<0.000000e+00> : vector<2x384xf32>
    %3 = tpu.matmul %2, %1, %cst {dimension_numbers = #tpu.dot_dimension_numbers<[1], [0], [0], [1], [0, 0, 1, 1], [], []>} : vector<2x784xbf16>, vector<784x384xbf16>, vector<2x384xf32> -> vector<2x384xf32>
    %c0_3 = arith.constant 0 : index
    %c0_4 = arith.constant 0 : index
    %4 = vector.load %arg3[%c0_3, %c0_4] : memref<1x384xf32, #tpu.memory_space<vmem>>, vector<1x384xf32>
    %5 = vector.broadcast %4 : vector<1x384xf32> to vector<2x384xf32>
    %6 = arith.addf %3, %5 : vector<2x384xf32>
    %cst_5 = arith.constant 0.000000e+00 : f32
    %7 = vector.broadcast %cst_5 : f32 to vector<2x384xf32>
    %8 = arith.maximumf %6, %7 : vector<2x384xf32>
    %c0_6 = arith.constant 0 : index
    %c0_7 = arith.constant 0 : index
    %9 = vector.load %arg4[%c0_6, %c0_7] : memref<384x128xbf16, #tpu.memory_space<vmem>>, vector<384x128xbf16>
    %10 = arith.truncf %8 : vector<2x384xf32> to vector<2x384xbf16>
    %cst_8 = arith.constant dense<0.000000e+00> : vector<2x128xf32>
    %11 = tpu.matmul %10, %9, %cst_8 {dimension_numbers = #tpu.dot_dimension_numbers<[1], [0], [0], [1], [0, 0, 1, 1], [], []>} : vector<2x384xbf16>, vector<384x128xbf16>, vector<2x128xf32> -> vector<2x128xf32>
    %c0_9 = arith.constant 0 : index
    %c0_10 = arith.constant 0 : index
    %12 = vector.load %arg5[%c0_9, %c0_10] : memref<1x128xf32, #tpu.memory_space<vmem>>, vector<1x128xf32>
    %13 = vector.broadcast %12 : vector<1x128xf32> to vector<2x128xf32>
    %14 = arith.addf %11, %13 : vector<2x128xf32>
    %cst_11 = arith.constant 0.000000e+00 : f32
    %15 = vector.broadcast %cst_11 : f32 to vector<2x128xf32>
    %16 = arith.maximumf %14, %15 : vector<2x128xf32>
    %c0_12 = arith.constant 0 : index
    %c0_13 = arith.constant 0 : index
    %17 = vector.load %arg6[%c0_12, %c0_13] : memref<128x128xbf16, #tpu.memory_space<vmem>>, vector<128x128xbf16>
    %18 = arith.truncf %16 : vector<2x128xf32> to vector<2x128xbf16>
    %cst_14 = arith.constant dense<0.000000e+00> : vector<2x128xf32>
    %19 = tpu.matmul %18, %17, %cst_14 {dimension_numbers = #tpu.dot_dimension_numbers<[1], [0], [0], [1], [0, 0, 1, 1], [], []>} : vector<2x128xbf16>, vector<128x128xbf16>, vector<2x128xf32> -> vector<2x128xf32>
    %c0_15 = arith.constant 0 : index
    %c0_16 = arith.constant 0 : index
    %20 = vector.load %arg7[%c0_15, %c0_16] : memref<1x128xf32, #tpu.memory_space<vmem>>, vector<1x128xf32>
    %21 = vector.broadcast %20 : vector<1x128xf32> to vector<2x128xf32>
    %22 = arith.addf %19, %21 : vector<2x128xf32>
    %c0_17 = arith.constant 0 : index
    %c0_18 = arith.constant 0 : index
    %23 = vector.load %arg8[%c0_17, %c0_18] : memref<2x128xf32, #tpu.memory_space<vmem>>, vector<2x128xf32>
    tpu.vector_store %arg8[%c0_17, %c0_18], %22 {strides = array<i32>} : memref<2x128xf32, #tpu.memory_space<vmem>>, vector<2x128xf32>,
    return
  }
  func.func @transform_0(%arg0: i32) -> (i32, i32) {
    %c0_i32 = arith.constant 0 : i32
    %c0_i32_0 = arith.constant 0 : i32
    return %arg0, %c0_i32 : i32, i32
  }
  func.func @transform_1(%arg0: i32) -> (i32, i32) {
    %c0_i32 = arith.constant 0 : i32
    %c0_i32_0 = arith.constant 0 : i32
    %c0_i32_1 = arith.constant 0 : i32
    return %c0_i32, %c0_i32_0 : i32, i32
  }
  func.func @transform_2(%arg0: i32) -> (i32, i32) {
    %c0_i32 = arith.constant 0 : i32
    %c0_i32_0 = arith.constant 0 : i32
    %c0_i32_1 = arith.constant 0 : i32
    return %c0_i32, %c0_i32_0 : i32, i32
  }
  func.func @transform_3(%arg0: i32) -> (i32, i32) {
    %c0_i32 = arith.constant 0 : i32
    %c0_i32_0 = arith.constant 0 : i32
    %c0_i32_1 = arith.constant 0 : i32
    return %c0_i32, %c0_i32_0 : i32, i32
  }
  func.func @transform_4(%arg0: i32) -> (i32, i32) {
    %c0_i32 = arith.constant 0 : i32
    %c0_i32_0 = arith.constant 0 : i32
    %c0_i32_1 = arith.constant 0 : i32
    return %c0_i32, %c0_i32_0 : i32, i32
  }
  func.func @transform_5(%arg0: i32) -> (i32, i32) {
    %c0_i32 = arith.constant 0 : i32
    %c0_i32_0 = arith.constant 0 : i32
    %c0_i32_1 = arith.constant 0 : i32
    return %c0_i32, %c0_i32_0 : i32, i32
  }
  func.func @transform_6(%arg0: i32) -> (i32, i32) {
    %c0_i32 = arith.constant 0 : i32
    %c0_i32_0 = arith.constant 0 : i32
    %c0_i32_1 = arith.constant 0 : i32
    return %c0_i32, %c0_i32_0 : i32, i32
  }
  func.func @transform_7(%arg0: i32) -> (i32, i32) {
    %c0_i32 = arith.constant 0 : i32
    %c0_i32_0 = arith.constant 0 : i32
    return %arg0, %c0_i32 : i32, i32
  }
}

</mosaic_0001>

<bundles_post_ra>
// kernel: tpu_custom_call.1
= control target key start
LH: loop header
LB: loop body
LE: loop exit
PB: predicated region body
PF: predicated region fallthrough
CT: control target
= control target key end

     0   :  { %12 = vsyncpa [#allocation3], 0  ;;  %s2773_s0 = inlined_call_operand.hbm [shape: f32[2,784], index: 0, kind: input, shape index: {}]   ;;  %s2774_s1 = inlined_call_operand.hbm [shape: bf16[784,384], index: 1, kind: input, shape index: {}]   ;;  %s2775_s2 = inlined_call_operand.vmem [shape: f32[1,384], index: 2, kind: input, shape index: {}]   ;;  %s2776_s3 = inlined_call_operand.hbm [shape: bf16[384,128], index: 3, kind: input, shape index: {}]   ;;  %s2777_s4 = inlined_call_operand.vmem [shape: f32[1,128], index: 4, kind: input, shape index: {}]   ;;  %s2778_s5 = inlined_call_operand.hbm [shape: bf16[128,128], index: 5, kind: input, shape index: {}]   ;;  %s2779_s6 = inlined_call_operand.vmem [shape: f32[1,128], index: 6, kind: input, shape index: {}]   ;;  %s2780_s7 = inlined_call_operand.hbm [shape: f32[2,128], index: 7, kind: output, shape index: {}]  }
   0x1   :  { %13 = vsyncpa [#allocation6], 0 }
   0x2   :  { %14 = vsyncpa [#allocation9], 0 }
   0x3   :  { %15 = vsyncpa [#allocation4], 0  ;;  %s2585_s24 = smov [#allocation5]   ;;  %s2467_s28 = scalar_lea.hbm %s2774_s1, 18816 }
   0x4   :  { %s31_s25 = sshll.u32 %s2585_s24, 4  ;;  %p2468_p0 = scmp.ne.s32.totalorder %s2774_s1, %s2467_s28  ;;  %s32_s25 = int_to_ptr.vmem [resolvable:$true] %s31_s25 }
   0x5   :  { %p2471_p1 = scmp.lt.u32.totalorder %s2467_s28, %s2774_s1 }
   0x7   :  { %p2473_p2 = pnand %p2471_p1, %p2468_p0 }
   0x9   :  { %2476 = shalt.err (!%p2473_p2)
}
   0xa   :  { %s2477_s10 = scalar_lea.vmem %s32_s25, 18816  ;;  %p2482_p4 = scmp.lt.s32.totalorder %s32_s25, %s32_s25 }
   0xb   :  { %p2478_p3 = scmp.ne.s32.totalorder %s32_s25, %s2477_s10  ;;  %p2483_p5 = scmp.lt.s32.totalorder %s2477_s10, %s2477_s10 }
   0xd   :  { %p2484_p6 = por %p2483_p5, %p2482_p4 }
   0xf   :  { %p2485_p7 = pnand %p2484_p6, %p2478_p3 }
  0x11   :  { %2488 = shalt.err (!%p2485_p7)
}
  0x12   :  { %s2586_s11 = smov 192   ;;  %s2587_s12 = smov 12  }
  0x13   :  { %37 = dma.hbm_to_vmem [thread:$0]  %s2774_s1, 18816, %s32_s25, [#allocation6], %s2586_s11, %s2586_s11, %s2587_s12  }
  0x14   :  { %s2588_s15 = smov [#allocation2]   ;;  %s2589_s17 = smov [#allocation7]  }
  0x15   :  { %s22_s16 = sshll.u32 %s2588_s15, 4  ;;  %s45_s18 = sshll.u32 %s2589_s17, 4  ;;  %s23_s16 = int_to_ptr.vmem [resolvable:$true] %s22_s16  ;;  %s46_s18 = int_to_ptr.vmem [resolvable:$true] %s45_s18 }
  0x16   :  { %s2489_s21 = scalar_lea.hbm %s2773_s0, 224 }
  0x17   :  { %p2490_p8 = scmp.ne.s32.totalorder %s2773_s0, %s2489_s21  ;;  %p2493_p9 = scmp.lt.u32.totalorder %s2489_s21, %s2773_s0 }
  0x19   :  { %p2495_p10 = pnand %p2493_p9, %p2490_p8 }
  0x1b   :  { %2498 = shalt.err (!%p2495_p10)
}
  0x1c   :  { %s2499_s1 = scalar_lea.vmem %s23_s16, 224  ;;  %p2504_p12 = scmp.lt.s32.totalorder %s23_s16, %s23_s16 }
  0x1d   :  { %p2500_p11 = scmp.ne.s32.totalorder %s23_s16, %s2499_s1  ;;  %p2505_p13 = scmp.lt.s32.totalorder %s2499_s1, %s2499_s1 }
  0x1f   :  { %p2506_p0 = por %p2505_p13, %p2504_p12 }
  0x21   :  { %p2507_p1 = pnand %p2506_p0, %p2500_p11 }
  0x23   :  { %2510 = shalt.err (!%p2507_p1)
}
  0x24   :  { %25 = dma.hbm_to_vmem [thread:$0]  %s2773_s0, 224, %s23_s16, [#allocation3]  }
  0x25   :  { %s2511_s30 = scalar_lea.hbm %s2776_s3, 3072 }
  0x26   :  { %p2512_p2 = scmp.ne.s32.totalorder %s2776_s3, %s2511_s30  ;;  %p2515_p3 = scmp.lt.u32.totalorder %s2511_s30, %s2776_s3 }
  0x28   :  { %p2517_p4 = pnand %p2515_p3, %p2512_p2 }
  0x2a   :  { %2520 = shalt.err (!%p2517_p4)
}
  0x2b   :  { %s2521_s12 = scalar_lea.vmem %s46_s18, 3072  ;;  %p2526_p6 = scmp.lt.s32.totalorder %s46_s18, %s46_s18 }
  0x2c   :  { %p2522_p5 = scmp.ne.s32.totalorder %s46_s18, %s2521_s12  ;;  %p2527_p7 = scmp.lt.s32.totalorder %s2521_s12, %s2521_s12 }
  0x2e   :  { %p2528_p8 = por %p2527_p7, %p2526_p6 }
  0x30   :  { %p2529_p9 = pnand %p2528_p8, %p2522_p5 }
  0x32   :  { %2532 = shalt.err (!%p2529_p9)
}
  0x33   :  { %s2590_s0 = smov 64   ;;  %s2591_s13 = smov 4  }
  0x34   :  { %51 = dma.hbm_to_vmem [thread:$0]  %s2776_s3, 3072, %s46_s18, [#allocation6], %s2590_s0, %s2590_s0, %s2591_s13  }
  0x35   :  { %s2592_s16 = smov [#allocation8]   ;;  %s2533_s21 = scalar_lea.hbm %s2778_s5, 1024 }
  0x36   :  { %s59_s17 = sshll.u32 %s2592_s16, 4  ;;  %p2534_p10 = scmp.ne.s32.totalorder %s2778_s5, %s2533_s21  ;;  %s60_s17 = int_to_ptr.vmem [resolvable:$true] %s59_s17 }
  0x37   :  { %p2537_p11 = scmp.lt.u32.totalorder %s2533_s21, %s2778_s5 }
  0x39   :  { %p2539_p12 = pnand %p2537_p11, %p2534_p10 }
  0x3b   :  { %2542 = shalt.err (!%p2539_p12)
}
  0x3c   :  { %s2543_s1 = scalar_lea.vmem %s60_s17, 1024  ;;  %p2548_p0 = scmp.lt.s32.totalorder %s60_s17, %s60_s17 }
  0x3d   :  { %p2544_p13 = scmp.ne.s32.totalorder %s60_s17, %s2543_s1  ;;  %p2549_p1 = scmp.lt.s32.totalorder %s2543_s1, %s2543_s1 }
  0x3f   :  { %p2550_p2 = por %p2549_p1, %p2548_p0 }
  0x41   :  { %p2551_p3 = pnand %p2550_p2, %p2544_p13 }
  0x43   :  { %2554 = shalt.err (!%p2551_p3)
}
  0x44   :  { %65 = dma.hbm_to_vmem [thread:$0]  %s2778_s5, 1024, %s60_s17, [#allocation9], %s2590_s0, %s2590_s0, %s2591_s13  }
  0x45   :  { %2577 = dma.done.wait [#allocation3], 224  }
  0x46   :  { %2578 = vsyncadd [#allocation3], 4294967072 }
  0x47   :  { %2579 = dma.done.wait [#allocation6], 21888  }
  0x48   :  { %2580 = vsyncadd [#allocation6], 4294945408 }
  0x49   :  { %2581 = dma.done.wait [#allocation9], 1024  }
  0x4a   :  { %2582 = vsyncadd [#allocation9], 4294966272  ;;  %v2237_v0 = vld [vmem:[#allocation5 + $0x4] ss:$12 sps:$4 sm:$0xff]   ;;  %v2239_v1 = vld [vmem:[#allocation5] ss:$12 sps:$4 sm:$0xff]   ;;  %v285_v9 = vlaneseq }
  0x4b   :  { %1133 = vmatprep.subr.bf16.mxu0 %v2237_v0  ;;  %v2240_v2 = vld [vmem:[#allocation5 + $0x1c] ss:$12 sps:$4 sm:$0xff]   ;;  %v2242_v3 = vld [vmem:[#allocation5 + $0x18] ss:$12 sps:$4 sm:$0xff]   ;;  %v2243_v4 = vld [vmem:[#allocation5 + $0x34] ss:$12 sps:$4 sm:$0xff]  }
  0x4c   :  { %1134 = vmatpush1.bf16.msra.mxu0 %v2239_v1  ;;  %v2245_v5 = vld [vmem:[#allocation5 + $0x30] ss:$12 sps:$4 sm:$0xff]   ;;  %v2246_v6 = vld [vmem:[#allocation5 + $0x4c] ss:$12 sps:$4 sm:$0xff]   ;;  %v2593_v7 = vmov 1983009808  }
  0x4d   :  { %1135 = vmatprep.subr.bf16.mxu0 %v2240_v2  ;;  %v283_v8 = vunpack.c.l.s4 %v2593_v7  ;;  %v2248_v10 = vld [vmem:[#allocation5 + $0x48] ss:$12 sps:$4 sm:$0xff]   ;;  %v2249_v11 = vld [vmem:[#allocation5 + $0x64] ss:$12 sps:$4 sm:$0xff]   ;;  %v2686_v13 = vshrl.u32 %v285_v9, 7  ;;  %vm1129_vm0 = vcmask 130048  }
  0x4e   :  { %v2251_v14 = vld [vmem:[#allocation5 + $0x60] ss:$12 sps:$4 sm:$0xff]   ;;  %v2252_v15 = vld [vmem:[#allocation5 + $0x7c] ss:$12 sps:$4 sm:$0xff]   ;;  %v2254_v17 = vld [vmem:[#allocation5 + $0x78] ss:$12 sps:$4 sm:$0xff]  }
  0x4f   :  { %v284_v12 = vunpack.c.0.s8 %v283_v8  ;;  %v2255_v18 = vld [vmem:[#allocation5 + $0x94] ss:$12 sps:$4 sm:$0xff]   ;;  %v2257_v21 = vld [vmem:[#allocation5 + $0x90] ss:$12 sps:$4 sm:$0xff]   ;;  %v2258_v22 = vld [vmem:[#allocation5 + $0xac] ss:$12 sps:$4 sm:$0xff]  }
  0x50   :  { %1136 = vmatpush1.bf16.msra.mxu0 %v2242_v3  ;;  %v2691_v19 = vld [vmem:[#allocation2] sm:$0xff]  ;;  %v2297_v29 = vld [vmem:[#allocation5 + $0xe0] ss:$12 sps:$4 sm:$0xff]   ;;  %v2264_v33 = vld [vmem:[#allocation5 + $0xdc] ss:$12 sps:$4 sm:$0xff]   ;;  %vm2595_vm1 = vmmov 0  }
  0x51   :  { %1137 = vmatprep.subr.bf16.mxu0 %v2243_v4  ;;  %v2689_v16 = vsub.s32 %v284_v12, %v2686_v13  ;;  %v2292_v24 = vld [vmem:[#allocation5 + $0xc8] ss:$12 sps:$4 sm:$0xff]   ;;  %v2261_v28 = vld [vmem:[#allocation5 + $0xc4] ss:$12 sps:$4 sm:$0xff]   ;;  %v2298_v30 = vld [vmem:[#allocation5 + $0x20] ss:$12 sps:$4 sm:$0xff]   ;;  %v281_v49 = vcombine.high %v2691_v19, %v2691_v19 }
  0x52   :  { %v2293_v26 = vld [vmem:[#allocation5 + $0x8] ss:$12 sps:$4 sm:$0xff]   ;;  %2056 = vmatprep.subr.bf16.mxu1 %v2292_v24  ;;  %v2263_v31 = vld [vmem:[#allocation5 + $0xc0] ss:$12 sps:$4 sm:$0xff]   ;;  %v2302_v32 = vld [vmem:[#allocation5 + $0xf8] ss:$12 sps:$4 sm:$0xff]  }
  0x53   :  { %v2695_v20 = vrot.slane %v2691_v19, %v2689_v16  ;;  %v2260_v27 = vld [vmem:[#allocation5 + $0xa8] ss:$12 sps:$4 sm:$0xff]   ;;  %2057 = vmatpush3.bf16.msra.mxu1 %v2293_v26  ;;  %v2303_v34 = vld [vmem:[#allocation5 + $0x38] ss:$12 sps:$4 sm:$0xff]   ;;  %v2307_v36 = vld [vmem:[#allocation5 + $0x110] ss:$12 sps:$4 sm:$0xff]   ;;  %v2702_v54 = vrot.slane %v281_v49, %v2689_v16 }
  0x54   :  { %1138 = vmatpush1.bf16.msra.mxu0 %v2245_v5  ;;  %2058 = vmatprep.subr.bf16.mxu1 %v2297_v29  ;;  %v2266_v35 = vld [vmem:[#allocation5 + $0xd8] ss:$12 sps:$4 sm:$0xff]   ;;  %v2267_v37 = vld [vmem:[#allocation5 + $0xf4] ss:$12 sps:$4 sm:$0xff]   ;;  %v2308_v38 = vld [vmem:[#allocation5 + $0x50] ss:$12 sps:$4 sm:$0xff]  }
  0x55   :  { %1139 = vmatprep.subr.bf16.mxu0 %v2246_v6  ;;  %v296_v23 = vcombine.high %v2695_v20, %v2695_v20  ;;  %v2312_v39 = vld [vmem:[#allocation5 + $0x128] ss:$12 sps:$4 sm:$0xff]   ;;  %v2269_v40 = vld [vmem:[#allocation5 + $0xf0] ss:$12 sps:$4 sm:$0xff]   ;;  %v2270_v41 = vld [vmem:[#allocation5 + $0x10c] ss:$12 sps:$4 sm:$0xff]   ;;  %v297_v59 = vcombine.high %v2702_v54, %v2702_v54  ;;  %v321_v62 = vpack.c.bf16 %v2695_v20, %v2695_v20 }
  0x56   :  { %v2313_v42 = vld [vmem:[#allocation5 + $0x68] ss:$12 sps:$4 sm:$0xff]   ;;  %v2317_v43 = vld [vmem:[#allocation5 + $0x140] ss:$12 sps:$4 sm:$0xff]   ;;  %v2273_v45 = vld [vmem:[#allocation5 + $0x124] ss:$12 sps:$4 sm:$0xff]  }
  0x57   :  { %v322_v25 = vpack.c.bf16 %v296_v23, %v296_v23  ;;  %2059 = vmatpush3.bf16.msra.mxu1 %v2298_v30  ;;  %v2272_v44 = vld [vmem:[#allocation5 + $0x108] ss:$12 sps:$4 sm:$0xff]   ;;  %v2318_v46 = vld [vmem:[#allocation5 + $0x80] ss:$12 sps:$4 sm:$0xff]   ;;  %v2322_v47 = vld [vmem:[#allocation5 + $0x158] ss:$12 sps:$4 sm:$0xff]   ;;  %v324_v1 = vpack.c.bf16 %v297_v59, %v297_v59 }
  0x58   :  { %1140 = vmatpush1.bf16.msra.mxu0 %v2248_v10  ;;  %2060 = vmatprep.subr.bf16.mxu1 %v2302_v32  ;;  %v2275_v48 = vld [vmem:[#allocation5 + $0x120] ss:$12 sps:$4 sm:$0xff]   ;;  %v2276_v50 = vld [vmem:[#allocation5 + $0x13c] ss:$12 sps:$4 sm:$0xff]   ;;  %v2323_v51 = vld [vmem:[#allocation5 + $0x98] ss:$12 sps:$4 sm:$0xff]  }
  0x59   :  { %1141 = vmatprep.subr.bf16.mxu0 %v2249_v11  ;;  %1165 = vmatprep.mubr.bf16.mxu0 %v322_v25  ;;  %v2327_v52 = vld [vmem:[#allocation5 + $0x170] ss:$12 sps:$4 sm:$0xff]   ;;  %v2278_v53 = vld [vmem:[#allocation5 + $0x138] ss:$12 sps:$4 sm:$0xff]   ;;  %v2279_v55 = vld [vmem:[#allocation5 + $0x154] ss:$12 sps:$4 sm:$0xff]  }
  0x5a   :  { %1329 = vmatprep.mubr.bf16.mxu1 %v322_v25  ;;  %v2328_v56 = vld [vmem:[#allocation5 + $0xb0] ss:$12 sps:$4 sm:$0xff]   ;;  %v2332_v57 = vld [vmem:[#allocation5 + $0x248] ss:$12 sps:$4 sm:$0xff]   ;;  %v2282_v60 = vld [vmem:[#allocation5 + $0x16c] ss:$12 sps:$4 sm:$0xff]  }
  0x5b   :  { %2061 = vmatpush3.bf16.msra.mxu1 %v2303_v34  ;;  %v2281_v58 = vld [vmem:[#allocation5 + $0x150] ss:$12 sps:$4 sm:$0xff]   ;;  %v2333_v61 = vld [vmem:[#allocation5 + $0x188] ss:$12 sps:$4 sm:$0xff]   ;;  %v2337_v63 = vld [vmem:[#allocation5 + $0x260] ss:$12 sps:$4 sm:$0xff]   ;;  %v2710_v34 = vpack.c.bf16 %v2702_v54, %v2702_v54 }
  0x5c   :  { %1142 = vmatpush1.bf16.msra.mxu0 %v2251_v14  ;;  %2062 = vmatprep.subr.bf16.mxu1 %v2307_v36  ;;  %v2284_v0 = vld [vmem:[#allocation5 + $0x168] ss:$12 sps:$4 sm:$0xff]   ;;  %v2288_v2 = vld [vmem:[#allocation5 + $0x184] ss:$12 sps:$4 sm:$0xff]   ;;  %v2338_v3 = vld [vmem:[#allocation5 + $0x1a0] ss:$12 sps:$4 sm:$0xff]  }
  0x5d   :  { %1143 = vmatprep.subr.bf16.mxu0 %v2252_v15  ;;  %v2342_v4 = vld [vmem:[#allocation5 + $0x278] ss:$12 sps:$4 sm:$0xff]   ;;  %v2286_v5 = vld [vmem:[#allocation5 + $0x180] ss:$12 sps:$4 sm:$0xff]   ;;  %v2291_v6 = vld [vmem:[#allocation5 + $0x19c] ss:$12 sps:$4 sm:$0xff]  }
  0x5e   :  { %v2343_v7 = vld [vmem:[#allocation5 + $0x1b8] ss:$12 sps:$4 sm:$0xff]   ;;  %v2347_v8 = vld [vmem:[#allocation5 + $0x290] ss:$12 sps:$4 sm:$0xff]   ;;  %v2296_v10 = vld [vmem:[#allocation5 + $0x1b4] ss:$12 sps:$4 sm:$0xff]  }
  0x5f   :  { %2063 = vmatpush3.bf16.msra.mxu1 %v2308_v38  ;;  %v2289_v9 = vld [vmem:[#allocation5 + $0x198] ss:$12 sps:$4 sm:$0xff]   ;;  %v2348_v11 = vld [vmem:[#allocation5 + $0x1d0] ss:$12 sps:$4 sm:$0xff]   ;;  %v2352_v12 = vld [vmem:[#allocation5 + $0x2a8] ss:$12 sps:$4 sm:$0xff]  }
  0x60   :  { %1144 = vmatpush1.bf16.msra.mxu0 %v2254_v17  ;;  %2064 = vmatprep.subr.bf16.mxu1 %v2312_v39  ;;  %v2294_v14 = vld [vmem:[#allocation5 + $0x1b0] ss:$12 sps:$4 sm:$0xff]   ;;  %v2301_v15 = vld [vmem:[#allocation5 + $0x1cc] ss:$12 sps:$4 sm:$0xff]   ;;  %v2353_v17 = vld [vmem:[#allocation5 + $0x1e8] ss:$12 sps:$4 sm:$0xff]  }
  0x61   :  { %1145 = vmatprep.subr.bf16.mxu0 %v2255_v18  ;;  %v2357_v18 = vld [vmem:[#allocation5 + $0x2c0] ss:$12 sps:$4 sm:$0xff]   ;;  %v2299_v19 = vld [vmem:[#allocation5 + $0x1c8] ss:$12 sps:$4 sm:$0xff]   ;;  %v2306_v20 = vld [vmem:[#allocation5 + $0x1e4] ss:$12 sps:$4 sm:$0xff]  }
  0x62   :  { %v2304_v23 = vld [vmem:[#allocation5 + $0x1e0] ss:$12 sps:$4 sm:$0xff]   ;;  %v2311_v24 = vld [vmem:[#allocation5 + $0x1fc] ss:$12 sps:$4 sm:$0xff]   ;;  %v2363_v25 = vld [vmem:[#allocation5 + $0x218] ss:$12 sps:$4 sm:$0xff]  }
  0x63   :  { %2065 = vmatpush3.bf16.msra.mxu1 %v2313_v42  ;;  %v2367_v26 = vld [vmem:[#allocation5 + $0x2f0] ss:$12 sps:$4 sm:$0xff]   ;;  %v2372_v30 = vld [vmem:[#allocation5 + $0x3c8] ss:$12 sps:$4 sm:$0xff]   ;;  %v2321_v32 = vld [vmem:[#allocation5 + $0x22c] ss:$12 sps:$4 sm:$0xff]  }
  0x64   :  { %1146 = vmatpush1.bf16.msra.mxu0 %v2257_v21  ;;  %2066 = vmatprep.subr.bf16.mxu1 %v2317_v43  ;;  %v2358_v21 = vld [vmem:[#allocation5 + $0x200] ss:$12 sps:$4 sm:$0xff]   ;;  %v2368_v29 = vld [vmem:[#allocation5 + $0x230] ss:$12 sps:$4 sm:$0xff]   ;;  %v2319_v36 = vld [vmem:[#allocation5 + $0x228] ss:$12 sps:$4 sm:$0xff]  }
  0x65   :  { %1147 = vmatprep.subr.bf16.mxu0 %v2258_v22  ;;  %v2362_v22 = vld [vmem:[#allocation5 + $0x2d8] ss:$12 sps:$4 sm:$0xff]   ;;  %v2378_v38 = vld [vmem:[#allocation5 + $0x320] ss:$12 sps:$4 sm:$0xff]   ;;  %v2387_v43 = vld [vmem:[#allocation5 + $0x410] ss:$12 sps:$4 sm:$0xff]  }
  0x66   :  { %v2382_v39 = vld [vmem:[#allocation5 + $0x3f8] ss:$12 sps:$4 sm:$0xff]   ;;  %v2339_v54 = vld [vmem:[#allocation5 + $0x288] ss:$12 sps:$4 sm:$0xff]   ;;  %s2597_s30 = smov [#allocation10]  }
  0x67   :  { %2067 = vmatpush3.bf16.msra.mxu1 %v2318_v46  ;;  %v2383_v42 = vld [vmem:[#allocation5 + $0x338] ss:$12 sps:$4 sm:$0xff]   ;;  %v2388_v46 = vld [vmem:[#allocation5 + $0x350] ss:$12 sps:$4 sm:$0xff]   ;;  %s1862_s8 = sshll.u32 %s2597_s30, 4  ;;  %s1863_s8 = int_to_ptr.vmem [resolvable:$true] %s1862_s8 }
  0x68   :  { %1148 = vmatpush1.bf16.msra.mxu0 %v2260_v27  ;;  %2068 = vmatprep.subr.bf16.mxu1 %v2322_v47  ;;  %v2309_v27 = vld [vmem:[#allocation5 + $0x1f8] ss:$12 sps:$4 sm:$0xff]   ;;  %v2392_v47 = vld [vmem:[#allocation5 + $0x428] ss:$12 sps:$4 sm:$0xff]   ;;  %p2560_p5 = scmp.lt.s32.totalorder %s1863_s8, %s1863_s8 }
  0x69   :  { %1149 = vmatprep.subr.bf16.mxu0 %v2261_v28  ;;  %v2316_v28 = vld [vmem:[#allocation5 + $0x214] ss:$12 sps:$4 sm:$0xff]   ;;  %v2341_v49 = vld [vmem:[#allocation5 + $0x28c] ss:$12 sps:$4 sm:$0xff]  }
  0x6a   :  { %v2402_v59 = vld [vmem:[#allocation5 + $0x458] ss:$12 sps:$4 sm:$0xff]  }
  0x6b   :  { %2069 = vmatpush3.bf16.msra.mxu1 %v2323_v51  ;;  %v2393_v51 = vld [vmem:[#allocation5 + $0x368] ss:$12 sps:$4 sm:$0xff]  }
  0x6c   :  { %1150 = vmatpush1.bf16.msra.mxu0 %v2263_v31  ;;  %2070 = vmatprep.subr.bf16.mxu1 %v2327_v52  ;;  %v2314_v31 = vld [vmem:[#allocation5 + $0x210] ss:$12 sps:$4 sm:$0xff]  }
  0x6d   :  { %1151 = vmatprep.subr.bf16.mxu0 %v2264_v33  ;;  %v2373_v33 = vld [vmem:[#allocation5 + $0x308] ss:$12 sps:$4 sm:$0xff]  }
  0x6f   :  { %2071 = vmatpush3.bf16.msra.mxu1 %v2328_v56  ;;  %v2346_v56 = vld [vmem:[#allocation5 + $0x2a4] ss:$12 sps:$4 sm:$0xff]  }
  0x70   :  { %1152 = vmatpush1.bf16.msra.mxu0 %v2266_v35  ;;  %2078 = vmatprep.subr.bf16.mxu1 %v2332_v57  ;;  %v2377_v35 = vld [vmem:[#allocation5 + $0x3e0] ss:$12 sps:$4 sm:$0xff]  }
  0x71   :  { %1153 = vmatprep.subr.bf16.mxu0 %v2267_v37  ;;  %v2326_v37 = vld [vmem:[#allocation5 + $0x244] ss:$12 sps:$4 sm:$0xff]   ;;  %v2398_v57 = vld [vmem:[#allocation5 + $0x380] ss:$12 sps:$4 sm:$0xff]  }
  0x72   :  { %1330 = vmatmul.mubr.bf16.vlgmr.msra.gmra.mrb[0].mxu1 %v321_v62 }
  0x73   :  { %2079 = vmatpush3.bf16.msra.mxu1 %v2333_v61  ;;  %1369 = vmatprep.mubr.bf16.mxu1 %v324_v1  ;;  %v2351_v61 = vld [vmem:[#allocation5 + $0x2bc] ss:$12 sps:$4 sm:$0xff]  }
  0x74   :  { %1154 = vmatpush1.bf16.msra.mxu0 %v2269_v40  ;;  %2080 = vmatprep.subr.bf16.mxu1 %v2337_v63  ;;  %v2324_v40 = vld [vmem:[#allocation5 + $0x240] ss:$12 sps:$4 sm:$0xff]   ;;  %v2403_v63 = vld [vmem:[#allocation5 + $0x398] ss:$12 sps:$4 sm:$0xff]  }
  0x75   :  { %1155 = vmatprep.subr.bf16.mxu0 %v2270_v41  ;;  %v2331_v41 = vld [vmem:[#allocation5 + $0x25c] ss:$12 sps:$4 sm:$0xff]  }
  0x77   :  { %2081 = vmatpush3.bf16.msra.mxu1 %v2338_v3  ;;  %v2354_v3 = vld [vmem:[#allocation5 + $0x2d0] ss:$12 sps:$4 sm:$0xff]  }
  0x78   :  { %1156 = vmatpush1.bf16.msra.mxu0 %v2272_v44  ;;  %2082 = vmatprep.subr.bf16.mxu1 %v2342_v4  ;;  %v2329_v44 = vld [vmem:[#allocation5 + $0x258] ss:$12 sps:$4 sm:$0xff]  }
  0x79   :  { %1157 = vmatprep.subr.bf16.mxu0 %v2273_v45  ;;  %v2336_v45 = vld [vmem:[#allocation5 + $0x274] ss:$12 sps:$4 sm:$0xff]   ;;  %v2361_v4 = vld [vmem:[#allocation5 + $0x2ec] ss:$12 sps:$4 sm:$0xff]  }
  0x7b   :  { %2083 = vmatpush3.bf16.msra.mxu1 %v2343_v7 }
  0x7c   :  { %1158 = vmatpush1.bf16.msra.mxu0 %v2275_v48  ;;  %2084 = vmatprep.subr.bf16.mxu1 %v2347_v8  ;;  %v2334_v48 = vld [vmem:[#allocation5 + $0x270] ss:$12 sps:$4 sm:$0xff]   ;;  %v2359_v8 = vld [vmem:[#allocation5 + $0x2e8] ss:$12 sps:$4 sm:$0xff]  }
  0x7d   :  { %1159 = vmatprep.subr.bf16.mxu0 %v2276_v50  ;;  %v82_v50 = vld [vmem:[#allocation2 + $0x8] sm:$0x3f] }
  0x7e   :  { %v305_v52 = vrot.slane %v82_v50, %v2689_v16 }
  0x7f   :  { %2085 = vmatpush3.bf16.msra.mxu1 %v2348_v11 }
  0x80   :  { %1160 = vmatpush1.bf16.msra.mxu0 %v2278_v53  ;;  %2086 = vmatprep.subr.bf16.mxu1 %v2352_v12  ;;  %v2397_v53 = vld [vmem:[#allocation5 + $0x440] ss:$12 sps:$4 sm:$0xff]   ;;  %v2714_v7 = vpack.c.bf16 %v305_v52, %v305_v52 }
  0x81   :  { %1161 = vmatprep.subr.bf16.mxu0 %v2279_v55  ;;  %v313_v55 = vcombine.high %v305_v52, %v305_v52  ;;  %v2364_v12 = vld [vmem:[#allocation5 + $0x300] ss:$12 sps:$4 sm:$0xff]  }
  0x82   :  { %v2439_v52 = vld [vmem:[#allocation7 + $0x50] sm:$0xff]  }
  0x83   :  { %2087 = vmatpush3.bf16.msra.mxu1 %v2353_v17  ;;  %v2369_v17 = vld [vmem:[#allocation5 + $0x318] ss:$12 sps:$4 sm:$0xff]  }
  0x84   :  { %1162 = vmatpush1.bf16.msra.mxu0 %v2281_v58  ;;  %2088 = vmatprep.subr.bf16.mxu1 %v2357_v18  ;;  %v326_v58 = vpack.c.bf16 %v313_v55, %v313_v55  ;;  %v2376_v18 = vld [vmem:[#allocation5 + $0x334] ss:$12 sps:$4 sm:$0xff]  }
  0x85   :  { %1163 = vmatprep.subr.bf16.mxu0 %v2282_v60  ;;  %v2344_v60 = vld [vmem:[#allocation5 + $0x2a0] ss:$12 sps:$4 sm:$0xff]   ;;  %v2442_v55 = vld [vmem:[#allocation7 + $0x18] sm:$0xff]  }
  0x87   :  { %2089 = vmatpush3.bf16.msra.mxu1 %v2358_v21  ;;  %v2386_v21 = vld [vmem:[#allocation5 + $0x364] ss:$12 sps:$4 sm:$0xff]  }
  0x88   :  { %1164 = vmatpush1.bf16.msra.mxu0 %v2284_v0  ;;  %2090 = vmatprep.subr.bf16.mxu1 %v2362_v22  ;;  %v2356_v0 = vld [vmem:[#allocation5 + $0x2d4] ss:$12 sps:$4 sm:$0xff]  }
  0x89   :  { %1174 = vmatprep.subr.bf16.mxu0 %v2288_v2  ;;  %v2408_v2 = vld [vmem:[#allocation5 + $0x3b0] ss:$12 sps:$4 sm:$0xff]   ;;  %v2384_v22 = vld [vmem:[#allocation5 + $0x360] ss:$12 sps:$4 sm:$0xff]  }
  0x8b   :  { %1166 = vmatmul.mubr.bf16.vlgmr.msra.gmra.mrb[0].mxu0 %v321_v62  ;;  %2091 = vmatpush3.bf16.msra.mxu1 %v2363_v25  ;;  %v2349_v62 = vld [vmem:[#allocation5 + $0x2b8] ss:$12 sps:$4 sm:$0xff]   ;;  %v2396_v25 = vld [vmem:[#allocation5 + $0x394] ss:$12 sps:$4 sm:$0xff]  }
  0x8c   :  { %1175 = vmatpush1.bf16.msra.mxu0 %v2286_v5  ;;  %1206 = vmatprep.mubr.bf16.mxu0 %v324_v1  ;;  %v2407_v1 = vld [vmem:[#allocation5 + $0x470] ss:$12 sps:$4 sm:$0xff]   ;;  %v2416_v5 = vld [vmem:[#allocation5 + $0x488] ss:$12 sps:$4 sm:$0xff]  }
  0x8d   :  { %1176 = vmatprep.subr.bf16.mxu0 %v2291_v6  ;;  %2092 = vmatprep.subr.bf16.mxu1 %v2367_v26  ;;  %v298_v6 = vcombine.high %v82_v50, %v82_v50  ;;  %v2394_v26 = vld [vmem:[#allocation5 + $0x390] ss:$12 sps:$4 sm:$0xff]   ;;  %v2437_v50 = vld [vmem:[#allocation7 + $0x48] sm:$0xff]  }
  0x8f   :  { %2093 = vmatpush3.bf16.msra.mxu1 %v2368_v29  ;;  %v312_v11 = vrot.slane %v298_v6, %v2689_v16  ;;  %v2374_v16 = vld [vmem:[#allocation5 + $0x330] ss:$12 sps:$4 sm:$0xff]  }
  0x90   :  { %1177 = vmatpush1.bf16.msra.mxu0 %v2289_v9  ;;  %2100 = vmatprep.subr.bf16.mxu1 %v2372_v30  ;;  %v2366_v9 = vld [vmem:[#allocation5 + $0x304] ss:$12 sps:$4 sm:$0xff]   ;;  %v2404_v30 = vld [vmem:[#allocation5 + $0x3c0] ss:$12 sps:$4 sm:$0xff]  }
  0x91   :  { %1178 = vmatprep.subr.bf16.mxu0 %v2296_v10  ;;  %v2594_v10 = vmov 0.0   ;;  %v2406_v29 = vld [vmem:[#allocation5 + $0x3c4] ss:$12 sps:$4 sm:$0xff]  }
  0x92   :  { %1370 = vmatmul.mubr.bf16.vlgmr.msra.gmra.mrb[4].mxu1 %v2710_v34  ;;  %v328_v6 = vld [vmem:[%s2775_s2] sm:$0x7] }
  0x93   :  { %2101 = vmatpush3.bf16.msra.mxu1 %v2373_v33  ;;  %1409 = vmatprep.mubr.bf16.mxu1 %v326_v58  ;;  %v2415_v33 = vld [vmem:[#allocation5 + $0x3f4] ss:$12 sps:$4 sm:$0xff]  }
  0x94   :  { %1179 = vmatpush1.bf16.msra.mxu0 %v2294_v14  ;;  %2102 = vmatprep.subr.bf16.mxu1 %v2377_v35  ;;  %v2371_v14 = vld [vmem:[#allocation5 + $0x31c] ss:$12 sps:$4 sm:$0xff]   ;;  %v2419_v35 = vld [vmem:[#allocation5 + $0x40c] ss:$12 sps:$4 sm:$0xff]  }
  0x95   :  { %1180 = vmatprep.subr.bf16.mxu0 %v2301_v15  ;;  %v2721_v15 = vpack.c.bf16 %v312_v11, %v312_v11 }
  0x97   :  { %2103 = vmatpush3.bf16.msra.mxu1 %v2378_v38  ;;  %v2420_v38 = vld [vmem:[#allocation5 + $0x420] ss:$12 sps:$4 sm:$0xff]  }
  0x98   :  { %1181 = vmatpush1.bf16.msra.mxu0 %v2299_v19  ;;  %2104 = vmatprep.subr.bf16.mxu1 %v2382_v39  ;;  %v2381_v19 = vld [vmem:[#allocation5 + $0x34c] ss:$12 sps:$4 sm:$0xff]   ;;  %v2425_v39 = vld [vmem:[#allocation5 + $0x43c] ss:$12 sps:$4 sm:$0xff]  }
  0x99   :  { %1182 = vmatprep.subr.bf16.mxu0 %v2306_v20  ;;  %v2379_v20 = vld [vmem:[#allocation5 + $0x348] ss:$12 sps:$4 sm:$0xff]  }
  0x9b   :  { %2105 = vmatpush3.bf16.msra.mxu1 %v2383_v42  ;;  %v2426_v42 = vld [vmem:[#allocation5 + $0x450] ss:$12 sps:$4 sm:$0xff]  }
  0x9c   :  { %1183 = vmatpush1.bf16.msra.mxu0 %v2304_v23  ;;  %2106 = vmatprep.subr.bf16.mxu1 %v2387_v43  ;;  %v2391_v23 = vld [vmem:[#allocation5 + $0x37c] ss:$12 sps:$4 sm:$0xff]   ;;  %v2431_v43 = vld [vmem:[#allocation5 + $0x46c] ss:$12 sps:$4 sm:$0xff]  }
  0x9d   :  { %1184 = vmatprep.subr.bf16.mxu0 %v2311_v24  ;;  %v2389_v24 = vld [vmem:[#allocation5 + $0x378] ss:$12 sps:$4 sm:$0xff]  }
  0x9f   :  { %2107 = vmatpush3.bf16.msra.mxu1 %v2388_v46  ;;  %v2432_v46 = vld [vmem:[#allocation5 + $0x480] ss:$12 sps:$4 sm:$0xff]  }
  0xa0   :  { %1185 = vmatpush1.bf16.msra.mxu0 %v2309_v27  ;;  %2108 = vmatprep.subr.bf16.mxu1 %v2392_v47  ;;  %v2401_v27 = vld [vmem:[#allocation5 + $0x3ac] ss:$12 sps:$4 sm:$0xff]   ;;  %v2596_v47 = vmov 0  }
  0xa1   :  { %1186 = vmatprep.subr.bf16.mxu0 %v2316_v28  ;;  %v2399_v28 = vld [vmem:[#allocation5 + $0x3a8] ss:$12 sps:$4 sm:$0xff]  }
  0xa3   :  { %2109 = vmatpush3.bf16.msra.mxu1 %v2393_v51  ;;  %v2438_v51 = vld [vmem:[#allocation7 + $0x8] sm:$0xff]  }
  0xa4   :  { %1187 = vmatpush1.bf16.msra.mxu0 %v2314_v31  ;;  %2110 = vmatprep.subr.bf16.mxu1 %v2397_v53  ;;  %v2411_v31 = vld [vmem:[#allocation5 + $0x3dc] ss:$12 sps:$4 sm:$0xff]  }
  0xa5   :  { %1188 = vmatprep.subr.bf16.mxu0 %v2321_v32  ;;  %v2409_v32 = vld [vmem:[#allocation5 + $0x3d8] ss:$12 sps:$4 sm:$0xff]   ;;  %v2440_v53 = vld [vmem:[#allocation7 + $0x10] sm:$0xff]  }
  0xa7   :  { %2111 = vmatpush3.bf16.msra.mxu1 %v2398_v57  ;;  %v2444_v57 = vld [vmem:[#allocation7 + $0x20] sm:$0xff]  }
  0xa8   :  { %1189 = vmatpush1.bf16.msra.mxu0 %v2319_v36  ;;  %2112 = vmatprep.subr.bf16.mxu1 %v2402_v59  ;;  %v2417_v36 = vld [vmem:[#allocation5 + $0x408] ss:$12 sps:$4 sm:$0xff]   ;;  %v2446_v59 = vld [vmem:[#allocation7 + $0x28] sm:$0xff]  }
  0xa9   :  { %1190 = vmatprep.subr.bf16.mxu0 %v2326_v37  ;;  %v2422_v37 = vld [vmem:[#allocation5 + $0x424] ss:$12 sps:$4 sm:$0xff]  }
  0xab   :  { %2113 = vmatpush3.bf16.msra.mxu1 %v2403_v63 }
  0xac   :  { %1191 = vmatpush1.bf16.msra.mxu0 %v2324_v40  ;;  %2114 = vmatprep.subr.bf16.mxu1 %v2407_v1  ;;  %v2423_v40 = vld [vmem:[#allocation5 + $0x438] ss:$12 sps:$4 sm:$0xff]   ;;  %v2447_v1 = vld [vmem:[#allocation7 + $0x70] sm:$0xff]  }
  0xad   :  { %1192 = vmatprep.subr.bf16.mxu0 %v2331_v41  ;;  %v2428_v41 = vld [vmem:[#allocation5 + $0x454] ss:$12 sps:$4 sm:$0xff]  }
  0xaf   :  { %2115 = vmatpush3.bf16.msra.mxu1 %v2408_v2  ;;  %v2448_v2 = vld [vmem:[#allocation7 + $0x30] sm:$0xff]  }
  0xb0   :  { %1193 = vmatpush1.bf16.msra.mxu0 %v2329_v44  ;;  %2164 = vmatprep.subr.bf16.mxu1 %v2594_v10  ;;  %v2429_v44 = vld [vmem:[#allocation5 + $0x468] ss:$12 sps:$4 sm:$0xff]  }
  0xb1   :  { %1194 = vmatprep.subr.bf16.mxu0 %v2336_v45  ;;  %v2434_v45 = vld [vmem:[#allocation5 + $0x484] ss:$12 sps:$4 sm:$0xff]  }
  0xb2   :  { %1410 = vmatmul.mubr.bf16.vlgmr.msra.gmra.mrb[8].mxu1 %v2714_v7 }
  0xb3   :  { %2165 = vmatpush3.bf16.msra.mxu1 %v2416_v5  ;;  %2166 = vmatprep.mubr.msk.bf16.mxu1 %vm2595_vm1, %v2594_v10  ;;  %v340_v5 = vsub.s32 2, %v2686_v13 }
  0xb4   :  { %1195 = vmatpush1.bf16.msra.mxu0 %v2334_v48  ;;  %v2435_v48 = vld [vmem:[#allocation7 + $0x40] sm:$0xff]  }
  0xb5   :  { %1196 = vmatprep.subr.bf16.mxu0 %v2341_v49  ;;  %v2436_v49 = vld [vmem:[#allocation7] sm:$0xff]   ;;  %2124 = vmatprep.subr.bf16.mxu1 %v2435_v48  ;;  %v2458_v48 = vld [vmem:[#allocation7 + $0xb8] sm:$0xff]  }
  0xb8   :  { %1197 = vmatpush1.bf16.msra.mxu0 %v2339_v54  ;;  %v2441_v54 = vld [vmem:[#allocation7 + $0x58] sm:$0xff]  }
  0xb9   :  { %1198 = vmatprep.subr.bf16.mxu0 %v2346_v56  ;;  %v2443_v56 = vld [vmem:[#allocation7 + $0x60] sm:$0xff]  }
  0xba   :  { %2167 = vmatmul.mubr.msk.bf16.vlgmr.msra.gmra.mrb[12].mxu1 %vm1129_vm0, %v2721_v15 }
  0xbb   :  { %2125 = vmatpush3.bf16.msra.mxu1 %v2436_v49 }
  0xbc   :  { %1199 = vmatpush1.bf16.msra.mxu0 %v2344_v60  ;;  %2126 = vmatprep.subr.bf16.mxu1 %v2437_v50 }
  0xbd   :  { %1200 = vmatprep.subr.bf16.mxu0 %v2351_v61 }
  0xbf   :  { %2127 = vmatpush3.bf16.msra.mxu1 %v2438_v51  ;;  %v2459_v51 = vld [vmem:[#allocation8] sm:$0xff]  }
  0xc0   :  { %1201 = vmatpush1.bf16.msra.mxu0 %v2349_v62  ;;  %2128 = vmatprep.subr.bf16.mxu1 %v2439_v52  ;;  %v2460_v52 = vld [vmem:[#allocation8 + $0x8] sm:$0xff]  }
  0xc1   :  { %1202 = vmatprep.subr.bf16.mxu0 %v2356_v0 }
  0xc3   :  { %2129 = vmatpush3.bf16.msra.mxu1 %v2440_v53  ;;  %v2461_v53 = vld [vmem:[#allocation8 + $0x10] sm:$0xff]  }
  0xc4   :  { %1203 = vmatpush1.bf16.msra.mxu0 %v2354_v3  ;;  %2130 = vmatprep.subr.bf16.mxu1 %v2441_v54  ;;  %v2449_v3 = vld [vmem:[#allocation7 + $0x78] sm:$0xff]  }
  0xc5   :  { %1204 = vmatprep.subr.bf16.mxu0 %v2361_v4  ;;  %v2450_v4 = vld [vmem:[#allocation7 + $0x38] sm:$0xff]  }
  0xc6   :  { %v2462_v54 = vld [vmem:[#allocation8 + $0x18] sm:$0xff]  }
  0xc7   :  { %2131 = vmatpush3.bf16.msra.mxu1 %v2442_v55  ;;  %v2463_v55 = vld [vmem:[#allocation8 + $0x20] sm:$0xff]  }
  0xc8   :  { %1205 = vmatpush1.bf16.msra.mxu0 %v2359_v8  ;;  %2132 = vmatprep.subr.bf16.mxu1 %v2443_v56  ;;  %v2464_v56 = vld [vmem:[#allocation8 + $0x28] sm:$0xff]  }
  0xc9   :  { %1215 = vmatprep.subr.bf16.mxu0 %v2366_v9 }
  0xcb   :  { %1207 = vmatmul.mubr.bf16.vlgmr.msra.gmra.mrb[0].mxu0 %v2710_v34  ;;  %v2413_v34 = vld [vmem:[#allocation5 + $0x3f0] ss:$12 sps:$4 sm:$0xff]   ;;  %2133 = vmatpush3.bf16.msra.mxu1 %v2444_v57  ;;  %v2465_v57 = vld [vmem:[#allocation8 + $0x30] sm:$0xff]  }
  0xcc   :  { %1216 = vmatpush1.bf16.msra.mxu0 %v2364_v12  ;;  %1247 = vmatprep.mubr.bf16.mxu0 %v326_v58  ;;  %v2445_v58 = vld [vmem:[#allocation7 + $0x68] sm:$0xff]  }
  0xcd   :  { %1217 = vmatprep.subr.bf16.mxu0 %v2371_v14  ;;  %2134 = vmatprep.subr.bf16.mxu1 %v2445_v58  ;;  %v2466_v58 = vld [vmem:[#allocation8 + $0x38] sm:$0xff]  }
  0xcf   :  { %2135 = vmatpush3.bf16.msra.mxu1 %v2446_v59 }
  0xd0   :  { %1218 = vmatpush1.bf16.msra.mxu0 %v2369_v17  ;;  %2136 = vmatprep.subr.bf16.mxu1 %v2447_v1 }
  0xd1   :  { %1219 = vmatprep.subr.bf16.mxu0 %v2376_v18 }
  0xd3   :  { %2137 = vmatpush3.bf16.msra.mxu1 %v2448_v2 }
  0xd4   :  { %1220 = vmatpush1.bf16.msra.mxu0 %v2374_v16  ;;  %2138 = vmatprep.subr.bf16.mxu1 %v2449_v3 }
  0xd5   :  { %1221 = vmatprep.subr.bf16.mxu0 %v2381_v19 }
  0xd7   :  { %2139 = vmatpush3.bf16.msra.mxu1 %v2450_v4 }
  0xd8   :  { %1222 = vmatpush1.bf16.msra.mxu0 %v2379_v20  ;;  %2170 = vmatprep.subr.bf16.mxu1 %v2594_v10 }
  0xd9   :  { %1223 = vmatprep.subr.bf16.mxu0 %v2386_v21 }
  0xdc   :  { %1224 = vmatpush1.bf16.msra.mxu0 %v2384_v22 }
  0xdd   :  { %1225 = vmatprep.subr.bf16.mxu0 %v2391_v23 }
  0xe0   :  { %1226 = vmatpush1.bf16.msra.mxu0 %v2389_v24 }
  0xe1   :  { %1227 = vmatprep.subr.bf16.mxu0 %v2396_v25 }
  0xe4   :  { %1228 = vmatpush1.bf16.msra.mxu0 %v2394_v26 }
  0xe5   :  { %1229 = vmatprep.subr.bf16.mxu0 %v2401_v27 }
  0xe8   :  { %1230 = vmatpush1.bf16.msra.mxu0 %v2399_v28  ;;  %v332_v28 = vsub.s32 0, %v2686_v13 }
  0xe9   :  { %1231 = vmatprep.subr.bf16.mxu0 %v2406_v29  ;;  %v336_v29 = vsub.s32 1, %v2686_v13  ;;  %v2453_v13 = vld [vmem:[#allocation7 + $0x90] sm:$0xff]  }
  0xec   :  { %1232 = vmatpush1.bf16.msra.mxu0 %v2404_v30  ;;  %v333_v30 = vrot.slane %v328_v6, %v332_v28 }
  0xed   :  { %1233 = vmatprep.subr.bf16.mxu0 %v2411_v31  ;;  %v337_v31 = vrot.slane %v328_v6, %v336_v29 }
  0xf0   :  { %1234 = vmatpush1.bf16.msra.mxu0 %v2409_v32 }
  0xf1   :  { %1235 = vmatprep.subr.bf16.mxu0 %v2415_v33 }
  0xf4   :  { %1236 = vmatpush1.bf16.msra.mxu0 %v2413_v34 }
  0xf5   :  { %1237 = vmatprep.subr.bf16.mxu0 %v2419_v35 }
  0xf8   :  { %1238 = vmatpush1.bf16.msra.mxu0 %v2417_v36 }
  0xf9   :  { %1239 = vmatprep.subr.bf16.mxu0 %v2422_v37 }
  0xfc   :  { %1240 = vmatpush1.bf16.msra.mxu0 %v2420_v38 }
  0xfd   :  { %1241 = vmatprep.subr.bf16.mxu0 %v2425_v39 }
 0x100   :  { %1242 = vmatpush1.bf16.msra.mxu0 %v2423_v40 }
 0x101   :  { %1243 = vmatprep.subr.bf16.mxu0 %v2428_v41  ;;  %v2451_v41 = vld [vmem:[#allocation7 + $0x80] sm:$0xff]  }
 0x104   :  { %1244 = vmatpush1.bf16.msra.mxu0 %v2426_v42 }
 0x105   :  { %1245 = vmatprep.subr.bf16.mxu0 %v2431_v43  ;;  %v2452_v43 = vld [vmem:[#allocation7 + $0x88] sm:$0xff]  }
 0x108   :  { %1246 = vmatpush1.bf16.msra.mxu0 %v2429_v44  ;;  %v2454_v44 = vld [vmem:[#allocation7 + $0x98] sm:$0xff]  }
 0x109   :  { %1256 = vmatprep.subr.bf16.mxu0 %v2434_v45  ;;  %v2455_v45 = vld [vmem:[#allocation7 + $0xa0] sm:$0xff]  }
 0x10b   :  { %1248 = vmatmul.mubr.bf16.vlgmr.msra.gmra.mrb[0].mxu0 %v2714_v7  ;;  %v341_v7 = vrot.slane %v328_v6, %v340_v5 }
 0x10c   :  { %1257 = vmatpush1.bf16.msra.mxu0 %v2432_v46  ;;  %1288 = vmatprep.mubr.bf16.mxu0 %v2596_v47  ;;  %v2456_v46 = vld [vmem:[#allocation7 + $0xa8] sm:$0xff]   ;;  %v2457_v47 = vld [vmem:[#allocation7 + $0xb0] sm:$0xff]  }
 0x117   :  { %2020 = vmatmul.mubr.msk.bf16.vlgmr.msra.gmra.mrb[0].mxu0 %vm1129_vm0, %v2721_v15 }
 0x145   :  { %v2072_v60 = vpop.f32.mrb[0].mxu1 }
 0x146   :  { %v2073_v61 = vpop.f32.mrb[1].mxu1 }
 0x147   :  { %v2074_v62 = vadd.f32 %v2073_v61, %v2072_v60  ;;  %v2075_v63 = vpop.f32.mrb[2].mxu1 }
 0x148   :  { %v2076_v0 = vpop.f32.mrb[3].mxu1 }
 0x149   :  { %v1332_v8 = vadd.f32 %v2074_v62, %v341_v7  ;;  %v2022_v0 = vld [vmem:[%s2777_s4] ss:$0 sm:$0xff]  ;;  %s2555_s4 = scalar_lea.vmem %s1863_s8, 32 }
 0x14a   :  { %p2556_p4 = scmp.ne.s32.totalorder %s1863_s8, %s2555_s4  ;;  %p2561_p6 = scmp.lt.s32.totalorder %s2555_s4, %s2555_s4 }
 0x14c   :  { %p2562_p7 = por %p2561_p6, %p2560_p5 }
 0x14e   :  { %p2563_p8 = pnand %p2562_p7, %p2556_p4 }
 0x165   :  { %v2094_v9 = vpop.f32.mrb[4].mxu1 }
 0x166   :  { %v2095_v11 = vpop.f32.mrb[5].mxu1 }
 0x167   :  { %v2096_v12 = vadd.f32 %v2095_v11, %v2094_v9  ;;  %v2097_v14 = vpop.f32.mrb[6].mxu1 }
 0x168   :  { %v2098_v15 = vpop.f32.mrb[7].mxu1 }
 0x169   :  { %v1372_v17 = vadd.f32 %v2096_v12, %v1332_v8 }
 0x185   :  { %v2116_v18 = vpop.f32.mrb[8].mxu1 }
 0x186   :  { %v2117_v16 = vpop.f32.mrb[9].mxu1 }
 0x187   :  { %v2118_v19 = vadd.f32 %v2117_v16, %v2116_v18  ;;  %v2119_v20 = vpop.f32.mrb[10].mxu1 }
 0x188   :  { %v2120_v21 = vpop.f32.mrb[11].mxu1 }
 0x189   :  { %v1412_v22 = vadd.f32 %v2118_v19, %v1372_v17 }
 0x18d   :  { %v1451_v23 = vpop.f32.mrb[12].mxu1 }
 0x18e   :  { %v1452_v24 = vadd.f32 %v1451_v23, %v1412_v22  ;;  %v2168_v25 = vpop.f32.mrb[13].mxu1 }
 0x18f   :  { %v1454_v26 = vpop.f32.mrb[14].mxu1 }
 0x190   :  { %v2169_v27 = vpop.f32.mrb[15].mxu1  ;;  %v1459_v49 = vmax.f32 %v1452_v24, 0.0 }
 0x192   :  { %v1510_v50 = vpack.c.bf16 %v1459_v49, %v1459_v49 }
 0x1ea   :  { %v1290_v32 = vpop.f32.mrb[0].mxu0 }
 0x1eb   :  { %v2210_v33 = vadd.f32 %v1290_v32, %v333_v30  ;;  %v1292_v34 = vpop.f32.mrb[1].mxu0 }
 0x1ec   :  { %v2211_v35 = vadd.f32 %v1292_v34, %v337_v31  ;;  %v1294_v36 = vpop.f32.mrb[2].mxu0 }
 0x1ed   :  { %v1457_v37 = vmax.f32 %v2210_v33, 0.0  ;;  %v1295_v38 = vpop.f32.mrb[3].mxu0 }
 0x1ee   :  { %v1458_v39 = vmax.f32 %v2211_v35, 0.0 }
 0x1ef   :  { %v1508_v42 = vpack.c.bf16 %v1457_v37, %v1457_v37 }
 0x1f0   :  { %v1509_v40 = vpack.c.bf16 %v1458_v39, %v1458_v39 }
 0x1f2   :  { %1694 = vmatprep.mubr.bf16.mxu1 %v1509_v40 }
 0x1f3   :  { %1695 = vmatmul.mubr.bf16.vlgmr.msra.gmra.mrb[16].mxu1 %v1508_v42 }
 0x1f4   :  { %2171 = vmatpush3.bf16.msra.mxu1 %v2451_v41  ;;  %2186 = vmatprep.mubr.msk.bf16.mxu1 %vm2595_vm1, %v2594_v10 }
 0x1f5   :  { %2172 = vmatprep.subr.bf16.mxu1 %v2594_v10 }
 0x1f8   :  { %2173 = vmatpush3.bf16.msra.mxu1 %v2452_v43 }
 0x1f9   :  { %2174 = vmatprep.subr.bf16.mxu1 %v2594_v10 }
 0x1fc   :  { %2175 = vmatpush3.bf16.msra.mxu1 %v2453_v13 }
 0x1fd   :  { %2176 = vmatprep.subr.bf16.mxu1 %v2594_v10 }
 0x200   :  { %2177 = vmatpush3.bf16.msra.mxu1 %v2454_v44 }
 0x201   :  { %2178 = vmatprep.subr.bf16.mxu1 %v2594_v10 }
 0x204   :  { %2179 = vmatpush3.bf16.msra.mxu1 %v2455_v45 }
 0x205   :  { %2180 = vmatprep.subr.bf16.mxu1 %v2594_v10 }
 0x208   :  { %2181 = vmatpush3.bf16.msra.mxu1 %v2456_v46 }
 0x209   :  { %2182 = vmatprep.subr.bf16.mxu1 %v2594_v10 }
 0x20c   :  { %2183 = vmatpush3.bf16.msra.mxu1 %v2457_v47 }
 0x20d   :  { %2184 = vmatprep.subr.bf16.mxu1 %v2594_v10 }
 0x210   :  { %2185 = vmatpush3.bf16.msra.mxu1 %v2458_v48 }
 0x211   :  { %2190 = vmatprep.subr.bf16.mxu1 %v2594_v10 }
 0x213   :  { %2187 = vmatmul.mubr.bf16.vlgmr.msra.gmra.mrb[20].mxu1 %v1510_v50 }
 0x214   :  { %2206 = vmatprep.mubr.msk.bf16.mxu1 %vm2595_vm1, %v2594_v10  ;;  %2191 = vmatpush3.bf16.msra.mxu1 %v2459_v51 }
 0x215   :  { %2192 = vmatprep.subr.bf16.mxu1 %v2594_v10 }
 0x218   :  { %2193 = vmatpush3.bf16.msra.mxu1 %v2460_v52 }
 0x219   :  { %2194 = vmatprep.subr.bf16.mxu1 %v2594_v10 }
 0x21c   :  { %2195 = vmatpush3.bf16.msra.mxu1 %v2461_v53 }
 0x21d   :  { %2196 = vmatprep.subr.bf16.mxu1 %v2594_v10 }
 0x220   :  { %2197 = vmatpush3.bf16.msra.mxu1 %v2462_v54 }
 0x221   :  { %2198 = vmatprep.subr.bf16.mxu1 %v2594_v10 }
 0x224   :  { %2199 = vmatpush3.bf16.msra.mxu1 %v2463_v55 }
 0x225   :  { %2200 = vmatprep.subr.bf16.mxu1 %v2594_v10 }
 0x228   :  { %2201 = vmatpush3.bf16.msra.mxu1 %v2464_v56 }
 0x229   :  { %2202 = vmatprep.subr.bf16.mxu1 %v2594_v10 }
 0x22c   :  { %2203 = vmatpush3.bf16.msra.mxu1 %v2465_v57 }
 0x22d   :  { %2204 = vmatprep.subr.bf16.mxu1 %v2594_v10  ;;  %v2047_v10 = vld [vmem:[%s2779_s6] ss:$0 sm:$0xff] }
 0x230   :  { %2205 = vmatpush3.bf16.msra.mxu1 %v2466_v58 }
 0x2c6   :  { %v2140_v59 = vpop.f32.mrb[16].mxu1 }
 0x2c7   :  { %v2141_v60 = vpop.f32.mrb[17].mxu1 }
 0x2c8   :  { %v2142_v61 = vadd.f32 %v2141_v60, %v2140_v59  ;;  %v2143_v62 = vpop.f32.mrb[18].mxu1 }
 0x2c9   :  { %v2144_v63 = vpop.f32.mrb[19].mxu1 }
 0x2ca   :  { %v1697_v1 = vadd.f32 %v2142_v61, %v2022_v0 }
 0x2e6   :  { %v1736_v2 = vpop.f32.mrb[20].mxu1 }
 0x2e7   :  { %v1737_v3 = vadd.f32 %v1736_v2, %v1697_v1  ;;  %v2188_v4 = vpop.f32.mrb[21].mxu1 }
 0x2e8   :  { %v1739_v5 = vpop.f32.mrb[22].mxu1 }
 0x2e9   :  { %v1742_v6 = vmax.f32 %v1737_v3, 0.0  ;;  %v2189_v7 = vpop.f32.mrb[23].mxu1 }
 0x2eb   :  { %v1759_v8 = vpack.c.bf16 %v1742_v6, %v1742_v6 }
 0x2ed   :  { %2207 = vmatmul.mubr.bf16.vlgmr.msra.gmra.mrb[24].mxu1 %v1759_v8 }
 0x3c0   :  { %v1849_v9 = vpop.f32.mrb[24].mxu1 }
 0x3c1   :  { %v1850_v11 = vadd.f32 %v2047_v10, %v1849_v9  ;;  %v2208_v12 = vpop.f32.mrb[25].mxu1 }
 0x3c2   :  { %v1852_v14 = vpop.f32.mrb[26].mxu1 }
 0x3c3   :  { %1855 = vst [vmem:[#allocation10] sm:$0x3] %v1850_v11  ;;  %v2209_v15 = vpop.f32.mrb[27].mxu1 }
 0x3c4   :  { %2566 = shalt.err (!%p2563_p8)
}
 0x3c5   :  { %s2567_s6 = scalar_lea.hbm %s2780_s7, 32 }
 0x3c6   :  { %p2568_p9 = scmp.ne.s32.totalorder %s2780_s7, %s2567_s6  ;;  %p2571_p10 = scmp.lt.u32.totalorder %s2567_s6, %s2780_s7 }
 0x3c8   :  { %p2573_p11 = pnand %p2571_p10, %p2568_p9 }
 0x3ca   :  { %2576 = shalt.err (!%p2573_p11)
}
 0x3cb   :  { %1865 = dma.vmem_to_hbm [thread:$0]  %s1863_s8, 32, %s2780_s7, [#allocation4]  }
 0x3cc   :  { %2583 = dma.done.wait [#allocation4], 32  }
 0x3cd   :  { %2584 = vsyncadd [#allocation4], 4294967264 }
 0x3ce   :  { %1869 = vsyncpa [#allocation3], 1 }
 0x3cf   :  { %1870 = vsyncpa [#allocation6], 1 }
 0x3d0   :  { %1871 = vsyncpa [#allocation9], 1 }
 0x3d1   :  { %1872 = vsyncpa [#allocation4], 1 }

</bundles_post_ra>
